<compile_context>
chip_gen: v7x
topology: tpu7x:2x2x1
jax: 0.10.0
libtpu: 0.0.40
codegen_flags: <defaults>
</compile_context>

<pallas_src>
import math

import jax
import jax.numpy as jnp
from jax.experimental import pallas as pl
from jax.experimental.pallas import tpu as pltpu


def _round_up(x, m):
    return ((x + m - 1) // m) * m


def _pick_hidden_tile(H, th):
    """Largest multiple-of-128 tile <= th that divides H exactly; else the full H.

    The hidden dim is the reduction axis of the second matmul, so ragged H blocks
    would accumulate garbage -- TH must divide H (or be H itself)."""
    if H <= th:
        return H
    cand = (th // 128) * 128
    while cand >= 128:
        if H % cand == 0:
            return cand
        cand -= 128
    return H


def linear_relu_kernel(x_ref, w1_ref, b1_ref, w2_ref, b2_ref, o_ref, acc_ref):
    # x_ref:   (TM, D)  bf16 token tile
    # w1_ref:  (D, TH)  bf16 first-linear weight tile (pre-transposed: h = x @ w1)
    # b1_ref:  (1, TH)  f32
    # w2_ref:  (TH, D)  bf16 second-linear weight tile (pre-transposed: y = h @ w2)
    # b2_ref:  (1, D)   f32
    # o_ref:   (TM, D)  output tile (x.dtype), written only on the last H step
    # acc_ref: (TM, D)  f32 accumulator, VMEM-resident across the H axis
    h_idx = pl.program_id(1)

    @pl.when(h_idx == 0)
    def _():
        acc_ref[...] = jnp.zeros_like(acc_ref)

    # Dropout(p=0.2) in eval mode -> identity (inference forward).
    # Linear1 for this tile of hidden units (bf16 MXU, f32 accumulate) + bias + ReLU.
    h = jnp.dot(x_ref[...], w1_ref[...], preferred_element_type=jnp.float32)
    h = jnp.maximum(h + b1_ref[...], 0.0)

    # Linear2 partial contribution of this H-tile, accumulated in f32 scratch.
    acc_ref[...] += jnp.dot(h.astype(w2_ref.dtype), w2_ref[...],
                            preferred_element_type=jnp.float32)

    @pl.when(h_idx == pl.num_programs(1) - 1)
    def _():
        o_ref[...] = (acc_ref[...] + b2_ref[...]).astype(o_ref.dtype)


def linear_relu(x, w1, b1, w2, b2, *, tm=512, th=512):
    """x: [..., d_model].  w1: [d_model, d_hidden], w2: [d_hidden, d_model].

    Weights are stored pre-transposed relative to PyTorch's (out, in) layout so the
    kernel computes plain row-major matmuls.  Matmul operands are bf16, accumulation
    and bias/ReLU are f32; output keeps x's dtype.
    """
    orig_shape = x.shape
    D = orig_shape[-1]
    H = w1.shape[1]
    M = int(math.prod(orig_shape[:-1]))

    # bf16 operands for the MXU; biases stay f32 (added on the f32 accumulator).
    x2 = x.reshape(M, D).astype(jnp.bfloat16)
    w1b = w1.astype(jnp.bfloat16)
    w2b = w2.astype(jnp.bfloat16)
    b1f = b1.reshape(1, H).astype(jnp.float32)
    b2f = b2.reshape(1, D).astype(jnp.float32)

    # Token tile.  A ragged last block is safe here (rows are independent; Pallas masks
    # out-of-bounds output stores), so no pad/slice HBM round trip is needed.
    TM = tm if M > tm else M
    # v7x megacore: the "parallel" M axis needs >=2 steps to shard across both cores.
    if M > 16 and pl.cdiv(M, TM) < 2:
        half = _round_up(pl.cdiv(M, 2), 8)
        if half < M:
            TM = half

    # Hidden tile must divide H exactly (reduction axis of the second matmul).
    TH = _pick_hidden_tile(H, th)

    grid = (pl.cdiv(M, TM), H // TH)

    out_itemsize = jnp.dtype(x.dtype).itemsize
    cost = pl.CostEstimate(
        flops=4 * M * D * H,                       # two MxDxH / MxHxD matmuls
        transcendentals=0,
        bytes_accessed=int(2 * M * D               # x (bf16)
                           + out_itemsize * M * D  # output
                           + grid[0] * 2 * (D * H + H * D)  # weights (bf16), per M-tile
                           + 4 * (H + D)),         # biases (f32)
    )

    out = pl.pallas_call(
        linear_relu_kernel,
        out_shape=jax.ShapeDtypeStruct((M, D), x.dtype),
        grid_spec=pltpu.PrefetchScalarGridSpec(
            num_scalar_prefetch=0,
            grid=grid,
            in_specs=[
                pl.BlockSpec((TM, D), lambda i, h: (i, 0)),   # x: tiled over tokens
                pl.BlockSpec((D, TH), lambda i, h: (0, h)),   # w1: tiled over hidden
                pl.BlockSpec((1, TH), lambda i, h: (0, h)),   # b1: tiled over hidden
                pl.BlockSpec((TH, D), lambda i, h: (h, 0)),   # w2: tiled over hidden
                pl.BlockSpec((1, D),  lambda i, h: (0, 0)),   # b2: constant (tiny)
            ],
            out_specs=pl.BlockSpec((TM, D), lambda i, h: (i, 0)),
            scratch_shapes=[pltpu.VMEM((TM, D), jnp.float32)],  # f32 accumulator
        ),
        compiler_params=pltpu.CompilerParams(
            dimension_semantics=("parallel", "arbitrary"),
            vmem_limit_bytes=48 * 1024 * 1024,   # headroom under v7x's 64 MiB physical
        ),
        cost_estimate=cost,
    )(x2, w1b, b1f, w2b, b2f)

    return out.reshape(orig_shape)


def reference(x, w1, b1, w2, b2):
    """Pure-JAX f32 reference for LinearReLU.forward (dropout = identity in eval)."""
    h = jnp.maximum(jnp.einsum("...d,dh->...h", x, w1) + b1, 0.0)
    return jnp.einsum("...h,hd->...d", h, w2) + b2


if __name__ == "__main__":
    B, S = 2, 8                    # batch, seq  -> M = 16 tokens
    d_model, d_hidden = 128, 512   # 128-multiples: lane-dense stores, full MXU lanes

    key = jax.random.PRNGKey(0)
    kx, kw1, kb1, kw2, kb2 = jax.random.split(key, 5)

    x = jax.random.normal(kx, (B, S, d_model), dtype=jnp.float32)

    # Deterministic synthetic parameters (pre-transposed: h = x @ w1, y = h @ w2).
    w1 = jax.random.normal(kw1, (d_model, d_hidden), dtype=jnp.float32) / jnp.sqrt(d_model)
    b1 = jax.random.normal(kb1, (d_hidden,), dtype=jnp.float32) * 0.01
    w2 = jax.random.normal(kw2, (d_hidden, d_model), dtype=jnp.float32) / jnp.sqrt(d_hidden)
    b2 = jax.random.normal(kb2, (d_model,), dtype=jnp.float32) * 0.01

    # th=256 so the demo exercises the H-tiled accumulator path (2 H steps).
    out = linear_relu(x, w1, b1, w2, b2, tm=256, th=256)
    out = jax.block_until_ready(out)

    ref = reference(x, w1, b1, w2, b2)
    assert out.shape == ref.shape, f"shape mismatch {out.shape} vs {ref.shape}"
    # bf16-operand matmuls (f32 accumulation): tolerance loosened vs the f32 reference.
    assert jnp.allclose(out, ref, atol=5e-2, rtol=5e-2), "mismatch vs reference"

    print("KERNEL_OK")
</pallas_src>

<mosaic_0001>
module attributes {stable_mosaic.version = 11 : i64} {
  func.func @linear_relu_kernel(%arg0: i32, %arg1: i32, %arg2: memref<16x128xbf16, #tpu.memory_space<vmem>>, %arg3: memref<128x256xbf16, #tpu.memory_space<vmem>>, %arg4: memref<1x256xf32, #tpu.memory_space<vmem>>, %arg5: memref<256x128xbf16, #tpu.memory_space<vmem>>, %arg6: memref<1x128xf32, #tpu.memory_space<vmem>>, %arg7: memref<16x128xf32, #tpu.memory_space<vmem>>, %arg8: memref<16x128xf32, #tpu.memory_space<vmem>>) attributes {dimension_semantics = [#tpu.dimension_semantics<parallel>, #tpu.dimension_semantics<arbitrary>], iteration_bounds = array<i64: 1, 2>, scalar_prefetch = 0 : i64, scratch_operands = 1 : i64, tpu.core_type = #tpu.core_type<tc>, window_params = [{transform_indices = @transform_0, window_bounds = array<i64: 16, 128>}, {transform_indices = @transform_1, window_bounds = array<i64: 128, 256>}, {transform_indices = @transform_2, window_bounds = array<i64: 1, 256>}, {transform_indices = @transform_3, window_bounds = array<i64: 256, 128>}, {pipeline_mode = #tpu.pipeline_mode<synchronous>, transform_indices = @transform_4, window_bounds = array<i64: 1, 128>}, {transform_indices = @transform_5, window_bounds = array<i64: 16, 128>}]} {
    %c0_i32 = arith.constant 0 : i32
    %0 = arith.cmpi eq, %arg1, %c0_i32 : i32
    %1 = arith.extui %0 : i1 to i32
    %c0_i32_0 = arith.constant 0 : i32
    %2 = arith.cmpi ne, %1, %c0_i32_0 : i32
    scf.if %2 {
      %cst_15 = arith.constant 0.000000e+00 : f32
      %20 = vector.broadcast %cst_15 : f32 to vector<16x128xf32>
      %c0_16 = arith.constant 0 : index
      %c0_17 = arith.constant 0 : index
      %21 = vector.load %arg8[%c0_16, %c0_17] : memref<16x128xf32, #tpu.memory_space<vmem>>, vector<16x128xf32>
      tpu.vector_store %arg8[%c0_16, %c0_17], %20 {strides = array<i32>} : memref<16x128xf32, #tpu.memory_space<vmem>>, vector<16x128xf32>,
    } else {
    }
    %c0 = arith.constant 0 : index
    %c0_1 = arith.constant 0 : index
    %3 = vector.load %arg2[%c0, %c0_1] : memref<16x128xbf16, #tpu.memory_space<vmem>>, vector<16x128xbf16>
    %c0_2 = arith.constant 0 : index
    %c0_3 = arith.constant 0 : index
    %4 = vector.load %arg3[%c0_2, %c0_3] : memref<128x256xbf16, #tpu.memory_space<vmem>>, vector<128x256xbf16>
    %cst = arith.constant dense<0.000000e+00> : vector<16x256xf32>
    %5 = tpu.matmul %3, %4, %cst {dimension_numbers = #tpu.dot_dimension_numbers<[1], [0], [0], [1], [0, 0, 1, 1], [], []>} : vector<16x128xbf16>, vector<128x256xbf16>, vector<16x256xf32> -> vector<16x256xf32>
    %c0_4 = arith.constant 0 : index
    %c0_5 = arith.constant 0 : index
    %6 = vector.load %arg4[%c0_4, %c0_5] : memref<1x256xf32, #tpu.memory_space<vmem>>, vector<1x256xf32>
    %7 = vector.broadcast %6 : vector<1x256xf32> to vector<16x256xf32>
    %8 = arith.addf %5, %7 : vector<16x256xf32>
    %cst_6 = arith.constant 0.000000e+00 : f32
    %9 = vector.broadcast %cst_6 : f32 to vector<16x256xf32>
    %10 = arith.maximumf %8, %9 : vector<16x256xf32>
    %c0_7 = arith.constant 0 : index
    %c0_8 = arith.constant 0 : index
    %11 = vector.load %arg8[%c0_7, %c0_8] : memref<16x128xf32, #tpu.memory_space<vmem>>, vector<16x128xf32>
    %12 = arith.truncf %10 : vector<16x256xf32> to vector<16x256xbf16>
    %c0_9 = arith.constant 0 : index
    %c0_10 = arith.constant 0 : index
    %13 = vector.load %arg5[%c0_9, %c0_10] : memref<256x128xbf16, #tpu.memory_space<vmem>>, vector<256x128xbf16>
    %cst_11 = arith.constant dense<0.000000e+00> : vector<16x128xf32>
    %14 = tpu.matmul %12, %13, %cst_11 {dimension_numbers = #tpu.dot_dimension_numbers<[1], [0], [0], [1], [0, 0, 1, 1], [], []>} : vector<16x256xbf16>, vector<256x128xbf16>, vector<16x128xf32> -> vector<16x128xf32>
    %15 = arith.addf %11, %14 : vector<16x128xf32>
    %c0_12 = arith.constant 0 : index
    %c0_13 = arith.constant 0 : index
    %16 = vector.load %arg8[%c0_12, %c0_13] : memref<16x128xf32, #tpu.memory_space<vmem>>, vector<16x128xf32>
    tpu.vector_store %arg8[%c0_12, %c0_13], %15 {strides = array<i32>} : memref<16x128xf32, #tpu.memory_space<vmem>>, vector<16x128xf32>,
    %c1_i32 = arith.constant 1 : i32
    %17 = arith.cmpi eq, %arg1, %c1_i32 : i32
    %18 = arith.extui %17 : i1 to i32
    %c0_i32_14 = arith.constant 0 : i32
    %19 = arith.cmpi ne, %18, %c0_i32_14 : i32
    scf.if %19 {
      %c0_15 = arith.constant 0 : index
      %c0_16 = arith.constant 0 : index
      %20 = vector.load %arg8[%c0_15, %c0_16] : memref<16x128xf32, #tpu.memory_space<vmem>>, vector<16x128xf32>
      %c0_17 = arith.constant 0 : index
      %c0_18 = arith.constant 0 : index
      %21 = vector.load %arg6[%c0_17, %c0_18] : memref<1x128xf32, #tpu.memory_space<vmem>>, vector<1x128xf32>
      %22 = vector.broadcast %21 : vector<1x128xf32> to vector<16x128xf32>
      %23 = arith.addf %20, %22 : vector<16x128xf32>
      %c0_19 = arith.constant 0 : index
      %c0_20 = arith.constant 0 : index
      %24 = vector.load %arg7[%c0_19, %c0_20] : memref<16x128xf32, #tpu.memory_space<vmem>>, vector<16x128xf32>
      tpu.vector_store %arg7[%c0_19, %c0_20], %23 {strides = array<i32>} : memref<16x128xf32, #tpu.memory_space<vmem>>, vector<16x128xf32>,
    } else {
    }
    return
  }
  func.func @transform_0(%arg0: i32, %arg1: i32) -> (i32, i32) {
    %c0_i32 = arith.constant 0 : i32
    %c0_i32_0 = arith.constant 0 : i32
    return %arg0, %c0_i32 : i32, i32
  }
  func.func @transform_1(%arg0: i32, %arg1: i32) -> (i32, i32) {
    %c0_i32 = arith.constant 0 : i32
    %c0_i32_0 = arith.constant 0 : i32
    return %c0_i32, %arg1 : i32, i32
  }
  func.func @transform_2(%arg0: i32, %arg1: i32) -> (i32, i32) {
    %c0_i32 = arith.constant 0 : i32
    %c0_i32_0 = arith.constant 0 : i32
    return %c0_i32, %arg1 : i32, i32
  }
  func.func @transform_3(%arg0: i32, %arg1: i32) -> (i32, i32) {
    %c0_i32 = arith.constant 0 : i32
    %c0_i32_0 = arith.constant 0 : i32
    return %arg1, %c0_i32 : i32, i32
  }
  func.func @transform_4(%arg0: i32, %arg1: i32) -> (i32, i32) {
    %c0_i32 = arith.constant 0 : i32
    %c0_i32_0 = arith.constant 0 : i32
    %c0_i32_1 = arith.constant 0 : i32
    return %c0_i32, %c0_i32_0 : i32, i32
  }
  func.func @transform_5(%arg0: i32, %arg1: i32) -> (i32, i32) {
    %c0_i32 = arith.constant 0 : i32
    %c0_i32_0 = arith.constant 0 : i32
    return %arg0, %c0_i32 : i32, i32
  }
}

</mosaic_0001>

<bundles_post_ra>
// kernel: tpu_custom_call.1
= control target key start
LH: loop header
LB: loop body
LE: loop exit
PB: predicated region body
PF: predicated region fallthrough
CT: control target
= control target key end

     0   :  { %s1517_s0 = inlined_call_operand.hbm [shape: bf16[16,128], index: 0, kind: input, shape index: {}]   ;;  %s1518_s1 = inlined_call_operand.hbm [shape: bf16[128,512], index: 1, kind: input, shape index: {}]   ;;  %s1519_s2 = inlined_call_operand.vmem [shape: f32[1,512], index: 2, kind: input, shape index: {}]   ;;  %s1520_s3 = inlined_call_operand.hbm [shape: bf16[512,128], index: 3, kind: input, shape index: {}]   ;;  %s1521_s4 = inlined_call_operand.vmem [shape: f32[1,128], index: 4, kind: input, shape index: {}]   ;;  %s1522_s5 = inlined_call_operand.hbm [shape: f32[16,128], index: 5, kind: output, shape index: {}]  }
   0x1   :  { %1529 = sst [smem:[#allocation13_spill]] %s1518_s1 }
   0x2   :  { %10 = vsyncpa [#allocation4], 0 }
   0x3   :  { %11 = vsyncpa [#allocation7], 0 }
   0x4   :  { %13 = vsyncpa [#allocation7 + $0x1], 0 }
   0x5   :  { %14 = vsyncpa [#allocation5], 0  ;;  %s1235_s18 = smov 0   ;;  %s1237_s19 = smov 0  }
   0x6   :  { %s1239_s20 = smov 0   ;;  %s1241_s21 = smov 0  }
   0x7   :  { %s1243_s22 = smov 0   ;;  %s1245_s23 = smov 0  }
   0x8 LB: > { %s29_s24 = sadd.s32 1, %s1186_s22  ;;  %s65_s25 = sadd.s32 1, %s1178_s20  ;;  %s1190_s23 = sphi %s1245_s23, %s20_s23   ;;  %s1186_s22 = sphi %s1243_s22, %s1546_s22   ;;  %s1182_s21 = sphi %s1241_s21, %s1545_s21   ;;  %s1178_s20 = sphi %s1239_s20, %s1544_s20   ;;  %s1174_s19 = sphi %s1237_s19, %s1543_s19   ;;  %s1170_s18 = sphi %s1235_s18, %s1542_s18  }
   0x9   : > { %p30_p0 = scmp.ge.s32.totalorder %s29_s24, 2  ;;  %p72_p1 = scmp.ne.s32.totalorder %s1178_s20, %s1174_s19 }
   0xa   : > { %p73_p2 = scmp.eq.s32.totalorder %s1190_s23, 0  ;;  %p914_p4 = scmp.lt.s32.totalorder %s1190_s23, 2 }
   0xb   : > { %s1548_s24 = smov (%p30_p0, %s29_s24), 0  ;;  %s220_s27 = sand.u32 1, %s1190_s23  }
   0xc   : > { %p74_p3 = por %p73_p2, %p72_p1  ;;  %s62_s26 = ssub.s32 %s1186_s22, %s1548_s24 }
   0xd   : > { %p63_p5 = scmp.eq.s32.totalorder %s62_s26, 0  ;;  %s222_s28 = sand.u32 1, %s1178_s20  }
   0xe   : > { %s866_s29 = sshll.u32 %s1186_s22, 7  ;;  %s1281_s6 = sshll.u32 %s222_s28, 7 }
   0xf   : > { %s1279_s30 = scalar_select %p63_p5, %s1178_s20, %s65_s25  }
  0x10   : > { %s1530_s1 = sld [smem:[#allocation13_spill]]  ;;  %p1288_p6 = pnand %p914_p4, %p74_p3 }
  0x11   : > { %s224_s11 = scalar_lea.vmem [#allocation6], %s1281_s6  ;;  %s1295_s13 = scalar_lea.sflag [#allocation7], %s220_s27 }
  0x12   : > { %s1531_s10 = scalar_select %p1288_p6, 1, 0 }
  0x13   : > { %s231_s12 = sshll.u32 %s224_s11, 4  ;;  %p1524_p8 = pneg %p1288_p6  ;;  %s1293_s12 = int_to_ptr.vmem [resolvable:$true] %s231_s12 }
  0x16   : > { %s1286_s9 = scalar_lea.hbm %s1530_s1, %s866_s29  ;;  %s1023_s17 = scalar_lea.hbm %s1530_s1, 4096 }
  0x17   : > { %s1018_s14 = scalar_lea.hbm %s1286_s9, 2048  ;;  %p1024_p11 = scmp.lt.u32.totalorder %s1286_s9, %s1530_s1 }
  0x18   : > { %p1019_p7 = scmp.ne.s32.totalorder %s1286_s9, %s1018_s14  ;;  %p1025_p12 = scmp.lt.u32.totalorder %s1023_s17, %s1018_s14 }
  0x19   : > { %p1027_p0 = scmp.lt.u32.totalorder %s1018_s14, %s1286_s9 }
  0x1a   : > { %p1021_p9 = pnand %p1524_p8, %p1019_p7  ;;  %p1026_p13 = por %p1025_p12, %p1024_p11 }
  0x1c   : > { %p1022_p10 = pneg %p1021_p9  ;;  %p1028_p1 = por %p1027_p0, %p1026_p13 }
  0x1e   : > { %p1029_p2 = pnand %p1028_p1, %p1022_p10 }
  0x20   : > { %1032 = shalt.err (!%p1029_p2)
}
  0x21   : > { %s1033_s27 = scalar_lea.vmem %s1293_s12, 2048  ;;  %s1192_s28 = smov [#allocation6]  }
  0x22   : > { %p1034_p3 = scmp.ne.s32.totalorder %s1293_s12, %s1033_s27  ;;  %s1038_s29 = sshll.u32 %s1192_s28, 4  ;;  %s1039_s29 = int_to_ptr.vmem [resolvable:$false] %s1038_s29 }
  0x23   : > { %s1040_s7 = scalar_lea.vmem %s1039_s29, 4096  ;;  %p1041_p7 = scmp.lt.s32.totalorder %s1293_s12, %s1039_s29 }
  0x24   : > { %p1036_p4 = pnand %p1034_p3, %p1524_p8  ;;  %p1042_p9 = scmp.lt.s32.totalorder %s1040_s7, %s1033_s27 }
  0x26   : > { %p1037_p5 = pneg %p1036_p4  ;;  %p1043_p11 = por %p1042_p9, %p1041_p7 }
  0x28   : > { %p1044_p12 = pnand %p1043_p11, %p1037_p5 }
  0x2a   : > { %1047 = shalt.err (!%p1044_p12)
}
  0x2b   : > { %s1193_s8 = smov 256   ;;  %s1194_s11 = smov 128  }
  0x2c   : > { %s1195_s14 = smov 8   ;;  %s1324_s15 = sadd.s32 4294967295, %s1190_s23  }
  0x2d   : > { %909 = dma.hbm_to_vmem [thread:$0]  (!%p1288_p6), %s1286_s9, 2048, %s1293_s12, %s1295_s13, %s1193_s8, %s1194_s11, %s1195_s14  }
  0x2e   : > { %p78_p10 = scmp.ne.s32.totalorder %s1174_s19, %s1170_s18  ;;  %p1523_p13 = scmp.eq.s32.totalorder %s1324_s15, 0 }
  0x2f   : > { %p812_p0 = scmp.ge.s32.totalorder %s1190_s23, 1  ;;  %p188_p1 = scmp.lt.s32.totalorder %s1190_s23, 3 }
  0x30   : > { %p1333_p2 = por %p1523_p13, %p78_p10  ;;  %s1196_s9 = smov [#allocation3]  }
  0x31   : > { %p1337_p3 = pnand %p812_p0, %p188_p1  ;;  %s203_s12 = sshll.u32 %s1196_s9, 4  ;;  %s1341_s12 = int_to_ptr.vmem [resolvable:$true] %s203_s12 }
  0x32   : > { %s1532_s16 = scalar_select %p1333_p2, 1, 0 }
  0x33   : > { %s1533_s17 = scalar_select %p1337_p3, 1, 0 }
  0x34   : > { %p902_p4 = pneg %p1337_p3  ;;  %s867_s18 = sshll.u32 %s1186_s22, 11 }
  0x35   : > { %s1355_s28 = scalar_lea.hbm %s1520_s3, %s867_s18  ;;  %s253_s29 = scalar_lea.vmem [#allocation8], %s1281_s6 }
  0x36   : > { %p1348_p5 = pnand %p902_p4, %p1523_p13  ;;  %s260_s7 = sshll.u32 %s253_s29, 4  ;;  %s1358_s7 = int_to_ptr.vmem [resolvable:$true] %s260_s7 }
  0x37   : > { %s1048_s14 = scalar_lea.hbm %s1517_s0, 128 }
  0x38   : > { %p1049_p7 = scmp.ne.s32.totalorder %s1517_s0, %s1048_s14  ;;  %p1050_p9 = pneg %p1348_p5 }
  0x39   : > { %p1055_p10 = scmp.lt.u32.totalorder %s1048_s14, %s1517_s0 }
  0x3a   : > { %p1051_p11 = pnand %p1050_p9, %p1049_p7 }
  0x3c   : > { %p1052_p12 = pneg %p1051_p11 }
  0x3e   : > { %p1057_p0 = pnand %p1055_p10, %p1052_p12 }
  0x40   : > { %1060 = shalt.err (!%p1057_p0)
}
  0x41   : > { %s1061_s6 = scalar_lea.vmem %s1341_s12, 128  ;;  %p1069_p8 = scmp.lt.s32.totalorder %s1341_s12, %s1341_s12 }
  0x42   : > { %p1062_p1 = scmp.ne.s32.totalorder %s1341_s12, %s1061_s6  ;;  %p1070_p2 = scmp.lt.s32.totalorder %s1061_s6, %s1061_s6 }
  0x44   : > { %p1064_p4 = pnand %p1062_p1, %p1050_p9  ;;  %p1071_p3 = por %p1070_p2, %p1069_p8 }
  0x46   : > { %p1065_p13 = pneg %p1064_p4 }
  0x48   : > { %p1072_p6 = pnand %p1071_p3, %p1065_p13 }
  0x4a   : > { %1075 = shalt.err (!%p1072_p6)
}
  0x4b   : > { %s1197_s1 = smov 64   ;;  %s1198_s18 = smov 4  }
  0x4c   : > { %905 = dma.hbm_to_vmem [thread:$0]  (!%p1348_p5), %s1517_s0, 128, %s1341_s12, [#allocation4], %s1197_s1, %s1197_s1, %s1198_s18  }
  0x4d   : > { %s1076_s11 = scalar_lea.hbm %s1355_s28, 2048  ;;  %p1535_p6 = scmp.ne.s32.totalorder %s1531_s10, 0 }
  0x4e   : > { %p1077_p8 = scmp.ne.s32.totalorder %s1355_s28, %s1076_s11  ;;  %s1081_s26 = scalar_lea.hbm %s1520_s3, 4096 }
  0x4f   : > { %p1536_p13 = pneg %p1535_p6  ;;  %p1082_p7 = scmp.lt.u32.totalorder %s1355_s28, %s1520_s3 }
  0x50   : > { %p1083_p9 = scmp.lt.u32.totalorder %s1081_s26, %s1076_s11  ;;  %p1085_p12 = scmp.lt.u32.totalorder %s1076_s11, %s1355_s28 }
  0x51   : > { %p1079_p2 = pnand %p1077_p8, %p1536_p13 }
  0x52   : > { %p1084_p11 = por %p1083_p9, %p1082_p7 }
  0x53   : > { %p1080_p3 = pneg %p1079_p2 }
  0x54   : > { %p1086_p10 = por %p1085_p12, %p1084_p11 }
  0x56   : > { %p1087_p0 = pnand %p1086_p10, %p1080_p3 }
  0x58   : > { %1090 = shalt.err (!%p1087_p0)
}
  0x59   : > { %s1091_s12 = scalar_lea.vmem %s1358_s7, 2048  ;;  %p1537_p1 = pmov %p1536_p13 }
  0x5a   : > { %p1092_p5 = scmp.ne.s32.totalorder %s1358_s7, %s1091_s12  ;;  %s1199_s25 = smov [#allocation8]  }
  0x5b   : > { %s1096_s29 = sshll.u32 %s1199_s25, 4  ;;  %s1097_s29 = int_to_ptr.vmem [resolvable:$false] %s1096_s29 }
  0x5c   : > { %p1094_p4 = pnand %p1092_p5, %p1537_p1  ;;  %s1098_s8 = scalar_lea.vmem %s1097_s29, 4096 }
  0x5d   : > { %p1099_p13 = scmp.lt.s32.totalorder %s1358_s7, %s1097_s29  ;;  %p1100_p2 = scmp.lt.s32.totalorder %s1098_s8, %s1091_s12 }
  0x5e   : > { %p1095_p8 = pneg %p1094_p4 }
  0x5f   : > { %p1101_p7 = por %p1100_p2, %p1099_p13 }
  0x61   : > { %p1102_p9 = pnand %p1101_p7, %p1095_p8 }
  0x63   : > { %1105 = shalt.err (!%p1102_p9)
}
  0x64   : > { %912 = dma.hbm_to_vmem [thread:$0]  (!%p1535_p6), %s1355_s28, 2048, %s1358_s7, %s1295_s13, %s1197_s1, %s1197_s1, %s1198_s18  }
  0x65   : > { %p1538_p3 = scmp.ne.s32.totalorder %s1533_s17, 0 }
  0x66   : > { %p1539_p11 = scmp.eq.s32.totalorder (!%p1538_p3), %s1324_s15, 0 }
  0x67   : > { %272 = sbr.rel (%p1538_p3) target bundleno = 637 (0x27d), region = 40 }
  0x6e   : > { %1157 = dma.done.wait (%p1539_p11), [#allocation4], 128   ;;  %p1540_p12 = pmov %p1539_p11 }
  0x6f   : > { %s278_s10 = sand.u32 1, %s1324_s15   ;;  %s280_s11 = sand.u32 1, %s1174_s19  }
  0x70   : > { %1159 = vsyncadd (%p1540_p12), [#allocation4], 4294967168  ;;  %s823_s14 = sshll.u32 %s280_s11, 7  ;;  %s279_s9 = scalar_lea.sflag [#allocation7], %s278_s10 }
  0x71   : > { %s1419_s26 = scalar_lea.vmem [#allocation6], %s823_s14  ;;  %p1541_p10 = scmp.ne.s32.totalorder %s1532_s16, 0 }
  0x73   : > { %1161 = dma.done.wait (%p1541_p10), %s279_s9, 4096  }
  0x74   : > { %1163 = vsyncadd (%p1541_p10), %s279_s9, 4294963200  ;;  %s825_s13 = sshll.u32 %s1182_s21, 1  ;;  %s1432_s1 = scalar_lea.vmem [#allocation8], %s823_s14 }
  0x75   : > { %p325_p6 = scmp.lt.s32.totalorder %s825_s13, 3  ;;  %p826_p0 = scmp.ne.s32.totalorder %s1182_s21, 0 }
  0x76   : > { %v1200_v0 = vmov (!%p826_p0), 0.0  }
  0x77   : > { %s1550_s13 = smov (!%p325_p6, %s825_s13), 3  ;;  %335 = sbr.rel (%p826_p0) target bundleno = 126 (0x7e), region = 56 }
  0x78   : > { %s327_s7 = scalar_lea.vmem %s1519_s2, %s1550_s13  ;;  %336 = vst [vmem:[#allocation2] sm:$0xff] (!%p826_p0), %v1200_v0  ;;  %337 = vst [vmem:[#allocation2 + $0x8] sm:$0xff] (!%p826_p0), %v1200_v0 }
  0x7e PF: > { %v977_v1 = vld [vmem:[%s1419_s26 + $0x4] ss:$8 sps:$4 sm:$0xff]   ;;  %v979_v2 = vld [vmem:[%s1419_s26] ss:$8 sps:$4 sm:$0xff]   ;;  %v1201_v3 = vmov 0   ;;  %v1006_v17 = vld [vmem:[%s1432_s1 + $0x50] sm:$0xff]   ;;  %v358_v35 = vlaneseq }
  0x7f   : > { %486 = vmatprep.mubr.bf16.mxu0 %v1201_v3  ;;  %454 = vmatprep.subr.bf16.mxu0 %v977_v1  ;;  %v980_v4 = vld [vmem:[%s1419_s26 + $0x14] ss:$8 sps:$4 sm:$0xff]   ;;  %v982_v5 = vld [vmem:[%s1419_s26 + $0x10] ss:$8 sps:$4 sm:$0xff]   ;;  %v983_v6 = vld [vmem:[%s1419_s26 + $0x24] ss:$8 sps:$4 sm:$0xff]  }
  0x80   : > { %455 = vmatpush1.bf16.msra.mxu0 %v979_v2  ;;  %v985_v7 = vld [vmem:[%s1419_s26 + $0x20] ss:$8 sps:$4 sm:$0xff]   ;;  %v986_v8 = vld [vmem:[%s1419_s26 + $0x34] ss:$8 sps:$4 sm:$0xff]   ;;  %v988_v9 = vld [vmem:[%s1419_s26 + $0x30] ss:$8 sps:$4 sm:$0xff]  }
  0x81   : > { %456 = vmatprep.subr.bf16.mxu0 %v980_v4  ;;  %v989_v10 = vld [vmem:[%s1419_s26 + $0x44] ss:$8 sps:$4 sm:$0xff]   ;;  %v991_v12 = vld [vmem:[%s1419_s26 + $0x40] ss:$8 sps:$4 sm:$0xff]   ;;  %v992_v14 = vld [vmem:[%s1419_s26 + $0x54] ss:$8 sps:$4 sm:$0xff]  }
  0x82   : > { %v1002_v11 = vld [vmem:[%s1432_s1 + $0x40] sm:$0xff]   ;;  %v1004_v15 = vld [vmem:[%s1432_s1 + $0x48] sm:$0xff]   ;;  %v994_v18 = vld [vmem:[%s1419_s26 + $0x50] ss:$8 sps:$4 sm:$0xff]   ;;  %v359_v36 = vshrl.u32 %v358_v35, 7  ;;  %p860_p5 = scmp.ne.s32.totalorder %s1182_s21, 1 }
  0x83   : > { %v1003_v13 = vld [vmem:[%s1432_s1] sm:$0xff]   ;;  %868 = vmatprep.subr.bf16.mxu1 %v1002_v11  ;;  %v1005_v16 = vld [vmem:[%s1432_s1 + $0x8] sm:$0xff]   ;;  %v1007_v20 = vld [vmem:[%s1432_s1 + $0x10] sm:$0xff]  }
  0x84   : > { %457 = vmatpush1.bf16.msra.mxu0 %v982_v5  ;;  %869 = vmatpush3.bf16.msra.mxu1 %v1003_v13  ;;  %v995_v19 = vld [vmem:[%s1419_s26 + $0x64] ss:$8 sps:$4 sm:$0xff]   ;;  %v1008_v21 = vld [vmem:[%s1432_s1 + $0x58] sm:$0xff]   ;;  %v997_v22 = vld [vmem:[%s1419_s26 + $0x60] ss:$8 sps:$4 sm:$0xff]   ;;  %v360_v37 = vsub.s32 0, %v359_v36 }
  0x85   : > { %458 = vmatprep.subr.bf16.mxu0 %v983_v6  ;;  %870 = vmatprep.subr.bf16.mxu1 %v1004_v15  ;;  %v998_v23 = vld [vmem:[%s1419_s26 + $0x74] ss:$8 sps:$4 sm:$0xff]   ;;  %v1010_v25 = vld [vmem:[%s1432_s1 + $0x60] sm:$0xff]   ;;  %v1000_v26 = vld [vmem:[%s1419_s26 + $0x70] ss:$8 sps:$4 sm:$0xff]   ;;  %v364_v39 = vsub.s32 1, %v359_v36 }
  0x86   : > { %v1009_v24 = vld [vmem:[%s1432_s1 + $0x18] sm:$0xff]   ;;  %v1011_v27 = vld [vmem:[%s1432_s1 + $0x20] sm:$0xff]   ;;  %v1012_v28 = vld [vmem:[%s1432_s1 + $0x68] sm:$0xff]  }
  0x87   : > { %v1001_v29 = vld [vmem:[#allocation3] sm:$0xff]   ;;  %v1013_v30 = vld [vmem:[%s1432_s1 + $0x28] sm:$0xff]   ;;  %v1014_v31 = vld [vmem:[%s1432_s1 + $0x70] sm:$0xff]  }
  0x88   : > { %459 = vmatpush1.bf16.msra.mxu0 %v985_v7  ;;  %871 = vmatpush3.bf16.msra.mxu1 %v1005_v16  ;;  %v1015_v32 = vld [vmem:[%s1432_s1 + $0x30] sm:$0xff]   ;;  %v1016_v33 = vld [vmem:[%s1432_s1 + $0x78] sm:$0xff]   ;;  %v356_v38 = vld [vmem:[%s327_s7] sm:$0x3] }
  0x89   : > { %460 = vmatprep.subr.bf16.mxu0 %v986_v8  ;;  %872 = vmatprep.subr.bf16.mxu1 %v1006_v17  ;;  %v1017_v34 = vld [vmem:[%s1432_s1 + $0x38] sm:$0xff]   ;;  %v361_v40 = vrot.slane %v356_v38, %v360_v37  ;;  %v365_v41 = vrot.slane %v356_v38, %v364_v39  ;;  %v501_v57 = vld [vmem:[#allocation2] sm:$0xff]  ;;  %v502_v61 = vld [vmem:[#allocation2 + $0x8] sm:$0xff] }
  0x8a   : > { %v861_v3 = vld [vmem:[%s1521_s4] ss:$0 sm:$0xff] (!%p860_p5) }
  0x8c   : > { %461 = vmatpush1.bf16.msra.mxu0 %v988_v9  ;;  %873 = vmatpush3.bf16.msra.mxu1 %v1007_v20 }
  0x8d   : > { %462 = vmatprep.subr.bf16.mxu0 %v989_v10  ;;  %874 = vmatprep.subr.bf16.mxu1 %v1008_v21 }
  0x90   : > { %463 = vmatpush1.bf16.msra.mxu0 %v991_v12  ;;  %875 = vmatpush3.bf16.msra.mxu1 %v1009_v24 }
  0x91   : > { %464 = vmatprep.subr.bf16.mxu0 %v992_v14  ;;  %876 = vmatprep.subr.bf16.mxu1 %v1010_v25 }
  0x94   : > { %465 = vmatpush1.bf16.msra.mxu0 %v994_v18  ;;  %877 = vmatpush3.bf16.msra.mxu1 %v1011_v27 }
  0x95   : > { %466 = vmatprep.subr.bf16.mxu0 %v995_v19  ;;  %878 = vmatprep.subr.bf16.mxu1 %v1012_v28 }
  0x98   : > { %467 = vmatpush1.bf16.msra.mxu0 %v997_v22  ;;  %879 = vmatpush3.bf16.msra.mxu1 %v1013_v30 }
  0x99   : > { %468 = vmatprep.subr.bf16.mxu0 %v998_v23  ;;  %880 = vmatprep.subr.bf16.mxu1 %v1014_v31 }
  0x9c   : > { %469 = vmatpush1.bf16.msra.mxu0 %v1000_v26  ;;  %881 = vmatpush3.bf16.msra.mxu1 %v1015_v32 }
  0x9d   : > { %882 = vmatprep.subr.bf16.mxu1 %v1016_v33 }
  0x9f   : > { %487 = vmatmul.mubr.bf16.vlgmr.msra.gmra.mrb[0].mxu0 %v1001_v29 }
  0xa0   : > { %883 = vmatpush3.bf16.msra.mxu1 %v1017_v34 }
 0x172   : > { %v488_v42 = vpop.f32.mrb[0].mxu0 }
 0x173   : > { %v489_v43 = vadd.f32 %v488_v42, %v361_v40  ;;  %v490_v44 = vpop.f32.mrb[1].mxu0 }
 0x174   : > { %v491_v45 = vadd.f32 %v490_v44, %v365_v41  ;;  %v492_v46 = vpop.f32.mrb[2].mxu0 }
 0x175   : > { %v493_v47 = vadd.f32 %v492_v46, %v361_v40  ;;  %v494_v48 = vpop.f32.mrb[3].mxu0  ;;  %v497_v50 = vmax.f32 %v489_v43, 0.0 }
 0x176   : > { %v495_v49 = vadd.f32 %v494_v48, %v365_v41  ;;  %v498_v52 = vmax.f32 %v491_v45, 0.0 }
 0x177   : > { %v499_v51 = vmax.f32 %v493_v47, 0.0 }
 0x178   : > { %v500_v53 = vmax.f32 %v495_v49, 0.0 }
 0x179   : > { %v503_v54 = vpack.c.bf16 %v499_v51, %v497_v50 }
 0x17a   : > { %v504_v55 = vpack.c.bf16 %v500_v53, %v498_v52 }
 0x17c   : > { %665 = vmatprep.mubr.bf16.mxu1 %v504_v55 }
 0x17d   : > { %666 = vmatmul.mubr.bf16.vlgmr.msra.gmra.mrb[0].mxu1 %v503_v54 }
 0x250   : > { %v884_v56 = vpop.f32.mrb[0].mxu1 }
 0x251   : > { %v885_v58 = vpop.f32.mrb[1].mxu1 }
 0x252   : > { %v886_v59 = vadd.f32 %v885_v58, %v884_v56  ;;  %v887_v60 = vpop.f32.mrb[2].mxu1  ;;  %681 = sbr.rel (%p860_p5) target bundleno = 611 (0x263), region = 60 }
 0x253   : > { %v888_v62 = vpop.f32.mrb[3].mxu1 }
 0x254   : > { %v674_v63 = vadd.f32 %v886_v59, %v501_v57  ;;  %v889_v0 = vadd.f32 %v888_v62, %v887_v60 }
 0x256   : > { %676 = vst [vmem:[#allocation2] sm:$0xff] %v674_v63  ;;  %v675_v1 = vadd.f32 %v889_v0, %v502_v61 }
 0x258   : > { %677 = vst [vmem:[#allocation2 + $0x8] sm:$0xff] %v675_v1 }
 0x25d   : > { %v682_v2 = vld [vmem:[#allocation2] sm:$0xff] }
 0x25e   : > { %v691_v5 = vadd.f32 %v861_v3, %v682_v2 }
 0x25f   : > { %v683_v4 = vld [vmem:[#allocation2 + $0x8] sm:$0xff] }
 0x260   : > { %v692_v6 = vadd.f32 %v861_v3, %v683_v4  ;;  %693 = vst [vmem:[#allocation9] sm:$0xff] %v691_v5 }
 0x262   : > { %694 = vst [vmem:[#allocation9 + $0x8] sm:$0xff] %v692_v6 }
 0x263 PF: > { %p916_p1 = scmp.eq.s32.totalorder %s1324_s15, 1  ;;  %s1202_s12 = smov [#allocation9]  }
 0x264   : > { %s704_s25 = sshll.u32 %s1202_s12, 4  ;;  %s705_s25 = int_to_ptr.vmem [resolvable:$true] %s704_s25 }
 0x265   : > { %s1106_s29 = scalar_lea.vmem %s705_s25, 256  ;;  %p1113_p2 = scmp.lt.s32.totalorder %s705_s25, %s705_s25 }
 0x266   : > { %p1107_p4 = scmp.ne.s32.totalorder %s705_s25, %s1106_s29  ;;  %p1114_p7 = scmp.lt.s32.totalorder %s1106_s29, %s1106_s29 }
 0x268   : > { %p1108_p8 = pnand %p1107_p4, %p916_p1  ;;  %p1115_p9 = por %p1114_p7, %p1113_p2 }
 0x26a   : > { %p1109_p13 = pneg %p1108_p8 }
 0x26c   : > { %p1116_p3 = pnand %p1115_p9, %p1109_p13 }
 0x26e   : > { %1119 = shalt.err (!%p1116_p3)
}
 0x26f   : > { %s1120_s10 = scalar_lea.hbm %s1522_s5, 256 }
 0x270   : > { %p1121_p11 = scmp.ne.s32.totalorder %s1522_s5, %s1120_s10  ;;  %p1126_p6 = scmp.lt.u32.totalorder %s1120_s10, %s1522_s5 }
 0x272   : > { %p1122_p12 = pnand %p1121_p11, %p916_p1 }
 0x274   : > { %p1123_p10 = pneg %p1122_p12 }
 0x276   : > { %p1128_p0 = pnand %p1126_p6, %p1123_p10 }
 0x278   : > { %1131 = shalt.err (!%p1128_p0)
}
 0x279   : > { %s1203_s13 = smov 128   ;;  %s1204_s17 = smov 8  }
 0x27a   : > { %899 = dma.vmem_to_hbm [thread:$0]  (%p916_p1), %s705_s25, 256, %s1522_s5, [#allocation5], %s1203_s13, %s1203_s13, %s1204_s17  }
 0x27b   : > { %1165 = dma.done.wait (%p916_p1), [#allocation5], 256  }
 0x27c   : > { %1167 = vsyncadd (%p916_p1), [#allocation5], 4294967040 }
 0x27d PF: > { %s20_s23 = sadd.s32 1, %s1190_s23   ;;  %s1542_s18 = smov %s1174_s19 }
 0x27e   : > { %p17_p5 = scmp.ge.s32.totalorder %s20_s23, 4   ;;  %s1543_s19 = smov %s1178_s20 }
 0x27f   : > { %s1544_s20 = smov %s1279_s30  ;;  %s1545_s21 = smov %s1186_s22 }
 0x280   : > { %s1546_s22 = smov %s1548_s24  ;;  %19 = sbr.rel (!%p17_p5) target bundleno = 8 (0x8), region = 106 }
 0x287   :  { %720 = vsyncpa [#allocation4], 1 }
 0x288   :  { %722 = vsyncpa [#allocation4 + $0x1], 1 }
 0x289   :  { %723 = vsyncpa [#allocation7], 1 }
 0x28a   :  { %725 = vsyncpa [#allocation7 + $0x1], 1 }
 0x28b   :  { %726 = vsyncpa [#allocation5], 1 }
 0x28c   :  { %728 = vsyncpa [#allocation5 + $0x1], 1 }

</bundles_post_ra>
